<compile_context>
chip_gen: v6e
topology: v6e:2x2x1
jax: 0.10.0
libtpu: 0.0.40
codegen_flags: <defaults>
</compile_context>

<pallas_src>
import functools

import jax
import jax.numpy as jnp
from jax import lax
from jax.experimental import pallas as pl
from jax.experimental.pallas import tpu as pltpu


def _round_up(a, b):
    return (a + b - 1) // b * b


def _transition_kernel(x_ref, w_ref, p_ref, o_ref, *, two_lh, compute_dtype):
    # x_ref: (C_in, xbl)    raw input slab (C_in on sublanes, L-span on lanes)
    # w_ref: (2*Ch, C_in)   stacked conv rows [even out-ch ; odd out-ch] * 0.25
    # p_ref: (2*tl, tl)     0/1 selection matrix pairing adjacent lanes
    # o_ref: (Ch, tl)       pooled output tile
    tl = o_ref.shape[-1]
    tl2 = 2 * tl
    j = pl.program_id(1)

    # Cast in-kernel (VPU convert) instead of a wrapper-side HBM cast pass.
    xb = x_ref[...][:, :tl2].astype(compute_dtype)          # (C_in, tl2)

    # relu(1x1 conv) for every output channel at tl2 consecutive L positions:
    # one stacked MXU matmul, f32 accumulation.
    y = jnp.maximum(
        jnp.dot(w_ref[...], xb, preferred_element_type=jnp.float32), 0.0)
    ch = y.shape[0] // 2
    # Average over output-channel pairs (the 0.25 scale is folded into W).
    yc = y[:ch] + y[ch:]                                     # (Ch, tl2)

    # Zero lanes past the pooled input range (partial final tile / odd L) so
    # stale VMEM garbage can never leak through the selection matmul.
    lane = lax.broadcasted_iota(jnp.int32, (1, tl2), 1)
    yc = jnp.where(j * tl2 + lane < two_lh, yc, 0.0)

    # Average over adjacent length pairs + 2:1 lane compaction via the MXU.
    o_ref[...] = jnp.dot(yc.astype(compute_dtype), p_ref[...],
                         preferred_element_type=jnp.float32).astype(o_ref.dtype)


def transition_layer(x, w, *, compute_dtype=jnp.bfloat16, out_dtype=None,
                     tile_l=512):
    """relu(conv1d_k1(x)) followed by AvgPool2d(2, 2).

    x: (N, C_in, L); w: (C_out, C_in) or PyTorch Conv1d weight (C_out, C_in, 1).
    compute_dtype: MXU operand dtype (bf16 by default; pass jnp.float32 for a
      numerically exact match of the f32 reference).  Accumulation is f32.
    out_dtype: output dtype (default: x.dtype; bf16 halves writeback traffic).
    """
    if w.ndim == 3:
        w = w[:, :, 0]
    N, C_in, L = x.shape
    C_out = w.shape[0]
    Ch, Lh = C_out // 2, L // 2
    out_dtype = jnp.dtype(x.dtype if out_dtype is None else out_dtype)
    cdt = jnp.dtype(compute_dtype if compute_dtype is not None else x.dtype)

    # Stacked conv weight: rows [even output channels ; odd output channels],
    # pre-scaled by 0.25 (relu(0.25*w.x) == 0.25*relu(w.x)).  Tiny, wrapper-side.
    w_stacked = jnp.concatenate([w[0:2 * Ch:2, :], w[1:2 * Ch:2, :]], axis=0)
    w_stacked = (0.25 * w_stacked).astype(cdt)

    # --- per-generation VMEM limit + lane-tile selection ---------------------
    try:
        vmem_cap = pltpu.get_tpu_info().vmem_capacity_bytes
    except Exception:
        vmem_cap = 64 * 1024 * 1024        # conservative (v7x-sized) fallback
    # ~75% of physical VMEM, capped at 96 MiB (v5e/v6e) -> 48 MiB on v7x.
    vmem_limit = max(min(int(0.75 * vmem_cap), 96 * 1024 * 1024),
                     32 * 1024 * 1024)

    in_bytes = jnp.dtype(x.dtype).itemsize
    c_bytes = cdt.itemsize
    o_bytes = out_dtype.itemsize

    if Lh <= 128:
        # Tiny length: use full-extent blocks (exempt from the (8,128) rule).
        tl, xbl = Lh, L
    else:
        # Lane tile = tl pooled positions (2*tl input positions), multiple of
        # 128 and never larger than the array (so no oversized blocks).
        tl = min(_round_up(max(tile_l, 128), 128), (Lh // 128) * 128)
        budget = int(0.7 * vmem_limit)

        def working_set(t):
            t2 = 2 * t
            return (2 * C_in * t2 * in_bytes          # x block (double buffered)
                    + 2 * Ch * t * o_bytes            # out block (double buffered)
                    + 2 * 2 * Ch * C_in * c_bytes     # stacked weight
                    + 2 * t2 * t * c_bytes            # pool selection matrix
                    + 3 * Ch * t2 * 4)                # y / yc f32 intermediates

        while tl > 128 and working_set(tl) > budget:
            tl = max(128, tl - 128)
        xbl = 2 * tl
    tl2 = 2 * tl
    num_l_tiles = pl.cdiv(Lh, tl)

    # 0/1 selection matrix: P[i, j] = 1 iff i // 2 == j  (sums lane pairs and
    # compacts 2*tl interleaved lanes down to tl output lanes).
    pool_mat = (lax.broadcasted_iota(jnp.int32, (tl2, tl), 0) // 2
                == lax.broadcasted_iota(jnp.int32, (tl2, tl), 1)).astype(cdt)

    kernel = functools.partial(_transition_kernel, two_lh=2 * Lh,
                               compute_dtype=cdt)
    return pl.pallas_call(
        kernel,
        out_shape=jax.ShapeDtypeStruct((N, Ch, Lh), out_dtype),
        grid_spec=pltpu.PrefetchScalarGridSpec(
            num_scalar_prefetch=0,
            grid=(N, num_l_tiles),
            in_specs=[
                # Original (N, C_in, L) layout: no wrapper transpose/slice/pad.
                pl.BlockSpec((None, C_in, xbl), lambda n, j: (n, 0, j)),
                # Constant-index weight / pool-matrix blocks: DMA'd once.
                pl.BlockSpec((2 * Ch, C_in), lambda n, j: (0, 0)),
                pl.BlockSpec((tl2, tl), lambda n, j: (0, 0)),
            ],
            out_specs=pl.BlockSpec((None, Ch, tl), lambda n, j: (n, 0, j)),
        ),
        compiler_params=pltpu.CompilerParams(
            dimension_semantics=("parallel", "parallel"),
            vmem_limit_bytes=vmem_limit),
    )(x, w_stacked, pool_mat)


def transition_layer_ref(x, w):
    """Pure-JAX reference: relu(conv1d_k1(x)) then AvgPool2d(2, 2)."""
    if w.ndim == 3:
        w = w[:, :, 0]
    y = jnp.maximum(jnp.einsum("oc,ncl->nol", w, x), 0.0)
    N, C_out, L = y.shape
    Ch, Lh = C_out // 2, L // 2
    y = y[:, :2 * Ch, :2 * Lh]
    return y.reshape(N, Ch, 2, Lh, 2).mean(axis=(2, 4))


if __name__ == "__main__":
    key = jax.random.PRNGKey(0)
    kx, kw, kx2, kw2 = jax.random.split(key, 4)

    # Small shape consistent with the module's forward: x is (N, C_in, L).
    N, C_in, C_out, L = 2, 8, 16, 16
    x = jax.random.normal(kx, (N, C_in, L), dtype=jnp.float32)
    # PyTorch Conv1d weight is (C_out, C_in, 1) for kernel_size=1.
    w = jax.random.normal(kw, (C_out, C_in, 1), dtype=jnp.float32) * 0.1

    ref = transition_layer_ref(x, w)

    # f32 operands: matches the f32 reference to rounding.
    out_f32 = jax.block_until_ready(
        transition_layer(x, w, compute_dtype=jnp.float32))
    assert out_f32.shape == (N, C_out // 2, L // 2), out_f32.shape
    assert jnp.allclose(out_f32, ref, atol=1e-5, rtol=1e-5), "f32 mismatch"

    # bf16 MXU operands (fast path), f32 accumulation + pooling.
    out_bf16 = jax.block_until_ready(transition_layer(x, w))
    assert out_bf16.shape == (N, C_out // 2, L // 2), out_bf16.shape
    assert jnp.allclose(out_bf16, ref, atol=5e-2, rtol=5e-2), "bf16 mismatch"

    # Longer-L config exercising the tiled path and the masked partial final
    # block (Lh = 640 with tl = 512 -> second tile is partial).
    N2, C_in2, C_out2, L2 = 1, 16, 8, 1280
    x2 = jax.random.normal(kx2, (N2, C_in2, L2), dtype=jnp.float32)
    w2 = jax.random.normal(kw2, (C_out2, C_in2), dtype=jnp.float32) * 0.1
    ref2 = transition_layer_ref(x2, w2)
    out2 = jax.block_until_ready(
        transition_layer(x2, w2, compute_dtype=jnp.float32))
    assert out2.shape == (N2, C_out2 // 2, L2 // 2), out2.shape
    assert jnp.allclose(out2, ref2, atol=1e-5, rtol=1e-5), "tiled-path mismatch"

    print("KERNEL_OK")
</pallas_src>

<mosaic_0001>
module attributes {stable_mosaic.version = 11 : i64} {
  func.func @_transition_kernel(%arg0: i32, %arg1: i32, %arg2: memref<1x8x16xf32, #tpu.memory_space<vmem>>, %arg3: memref<16x8xf32, #tpu.memory_space<vmem>>, %arg4: memref<16x8xf32, #tpu.memory_space<vmem>>, %arg5: memref<1x8x8xf32, #tpu.memory_space<vmem>>) attributes {dimension_semantics = [#tpu.dimension_semantics<parallel>, #tpu.dimension_semantics<parallel>], iteration_bounds = array<i64: 2, 1>, scalar_prefetch = 0 : i64, scratch_operands = 0 : i64, tpu.core_type = #tpu.core_type<tc>, window_params = [{transform_indices = @transform_0, window_bounds = array<i64: 1, 8, 16>}, {pipeline_mode = #tpu.pipeline_mode<synchronous>, transform_indices = @transform_1, window_bounds = array<i64: 16, 8>}, {pipeline_mode = #tpu.pipeline_mode<synchronous>, transform_indices = @transform_2, window_bounds = array<i64: 16, 8>}, {transform_indices = @transform_3, window_bounds = array<i64: 1, 8, 8>}]} {
    %c0 = arith.constant 0 : index
    %c0_0 = arith.constant 0 : index
    %c0_1 = arith.constant 0 : index
    %0 = vector.load %arg2[%c0, %c0_0, %c0_1] : memref<1x8x16xf32, #tpu.memory_space<vmem>>, vector<1x8x16xf32>
    %1 = vector.shape_cast %0 : vector<1x8x16xf32> to vector<8x16xf32>
    %c0_2 = arith.constant 0 : index
    %c0_3 = arith.constant 0 : index
    %2 = vector.load %arg3[%c0_2, %c0_3] : memref<16x8xf32, #tpu.memory_space<vmem>>, vector<16x8xf32>
    %cst = arith.constant dense<0.000000e+00> : vector<16x16xf32>
    %3 = tpu.matmul %2, %1, %cst {dimension_numbers = #tpu.dot_dimension_numbers<[1], [0], [0], [1], [0, 0, 1, 1], [], []>} : vector<16x8xf32>, vector<8x16xf32>, vector<16x16xf32> -> vector<16x16xf32>
    %cst_4 = arith.constant 0.000000e+00 : f32
    %4 = vector.broadcast %cst_4 : f32 to vector<16x16xf32>
    %5 = arith.maximumf %3, %4 : vector<16x16xf32>
    %6 = vector.extract_strided_slice %5 {offsets = [0, 0], sizes = [8, 16], strides = [1, 1]} : vector<16x16xf32> to vector<8x16xf32>
    %7 = vector.extract_strided_slice %5 {offsets = [8, 0], sizes = [8, 16], strides = [1, 1]} : vector<16x16xf32> to vector<8x16xf32>
    %8 = arith.addf %6, %7 : vector<8x16xf32>
    %9 = tpu.iota {dimensions = array<i32: 1>} : vector<1x16xi32>
    %c16_i32 = arith.constant 16 : i32
    %10 = arith.muli %arg1, %c16_i32 : i32
    %11 = vector.broadcast %10 : i32 to vector<1x16xi32>
    %12 = arith.addi %11, %9 : vector<1x16xi32>
    %c16_i32_5 = arith.constant 16 : i32
    %13 = vector.broadcast %c16_i32_5 : i32 to vector<1x16xi32>
    %14 = arith.cmpi slt, %12, %13 : vector<1x16xi32>
    %cst_6 = arith.constant 0.000000e+00 : f32
    %15 = vector.shape_cast %14 : vector<1x16xi1> to vector<1x16xi1>
    %16 = vector.broadcast %15 : vector<1x16xi1> to vector<8x16xi1>
    %17 = vector.broadcast %cst_6 : f32 to vector<8x16xf32>
    %18 = arith.select %16, %8, %17 : vector<8x16xi1>, vector<8x16xf32>
    %c0_7 = arith.constant 0 : index
    %c0_8 = arith.constant 0 : index
    %19 = vector.load %arg4[%c0_7, %c0_8] : memref<16x8xf32, #tpu.memory_space<vmem>>, vector<16x8xf32>
    %cst_9 = arith.constant dense<0.000000e+00> : vector<8x8xf32>
    %20 = tpu.matmul %18, %19, %cst_9 {dimension_numbers = #tpu.dot_dimension_numbers<[1], [0], [0], [1], [0, 0, 1, 1], [], []>} : vector<8x16xf32>, vector<16x8xf32>, vector<8x8xf32> -> vector<8x8xf32>
    %c0_10 = arith.constant 0 : index
    %c0_11 = arith.constant 0 : index
    %c0_12 = arith.constant 0 : index
    %21 = vector.load %arg5[%c0_10, %c0_11, %c0_12] : memref<1x8x8xf32, #tpu.memory_space<vmem>>, vector<1x8x8xf32>
    %22 = vector.shape_cast %21 : vector<1x8x8xf32> to vector<8x8xf32>
    %23 = vector.shape_cast %20 : vector<8x8xf32> to vector<1x8x8xf32>
    tpu.vector_store %arg5[%c0_10, %c0_11, %c0_12], %23 {strides = array<i32>} : memref<1x8x8xf32, #tpu.memory_space<vmem>>, vector<1x8x8xf32>,
    return
  }
  func.func @transform_0(%arg0: i32, %arg1: i32) -> (i32, i32, i32) {
    %c0_i32 = arith.constant 0 : i32
    %c0_i32_0 = arith.constant 0 : i32
    return %arg0, %c0_i32, %arg1 : i32, i32, i32
  }
  func.func @transform_1(%arg0: i32, %arg1: i32) -> (i32, i32) {
    %c0_i32 = arith.constant 0 : i32
    %c0_i32_0 = arith.constant 0 : i32
    %c0_i32_1 = arith.constant 0 : i32
    return %c0_i32, %c0_i32_0 : i32, i32
  }
  func.func @transform_2(%arg0: i32, %arg1: i32) -> (i32, i32) {
    %c0_i32 = arith.constant 0 : i32
    %c0_i32_0 = arith.constant 0 : i32
    %c0_i32_1 = arith.constant 0 : i32
    return %c0_i32, %c0_i32_0 : i32, i32
  }
  func.func @transform_3(%arg0: i32, %arg1: i32) -> (i32, i32, i32) {
    %c0_i32 = arith.constant 0 : i32
    %c0_i32_0 = arith.constant 0 : i32
    return %arg0, %c0_i32, %arg1 : i32, i32, i32
  }
}

</mosaic_0001>

<bundles_post_ra>
// kernel: tpu_custom_call.1
= control target key start
LH: loop header
LB: loop body
LE: loop exit
PB: predicated region body
PF: predicated region fallthrough
CT: control target
= control target key end

     0   :  { %8 = vsyncpa [#allocation3], 0  ;;  %s767_s0 = inlined_call_operand.vmem [shape: f32[2,8,16], index: 0, kind: input, shape index: {}]   ;;  %s768_s1 = inlined_call_operand.vmem [shape: f32[16,8], index: 1, kind: input, shape index: {}]   ;;  %s769_s2 = inlined_call_operand.vmem [shape: f32[16,8], index: 2, kind: input, shape index: {}]   ;;  %s770_s3 = inlined_call_operand.hbm [shape: f32[2,8,8], index: 3, kind: output, shape index: {}]  }
   0x1   :  { %10 = vsyncpa [#allocation3 + $0x1], 0  ;;  %s641_s12 = smov 0   ;;  %s643_s13 = smov 0  }
   0x2   :  { %s645_s14 = smov 0   ;;  %s647_s15 = smov 0  }
   0x3   :  { %s649_s16 = smov 0   ;;  %s651_s17 = smov 0  }
   0x4 LB: > { %s451_s18 = sadd.s32 4294967295, %s616_s17   ;;  %s452_s19 = sadd.s32 4294967294, %s616_s17   ;;  %s616_s17 = sphi %s651_s17, %s16_s17   ;;  %s612_s16 = sphi %s649_s16, %s777_s16   ;;  %s608_s15 = sphi %s647_s15, %s776_s15   ;;  %s604_s14 = sphi %s645_s14, %s775_s14   ;;  %s600_s13 = sphi %s643_s13, %s774_s13   ;;  %s596_s12 = sphi %s641_s12, %s773_s12  }
   0x5   : > { %s28_s20 = sadd.s32 1, %s612_s16  ;;  %s107_s21 = sadd.s32 1, %s604_s14 }
   0x6   : > { %p30_p0 = scmp.ge.s32.totalorder %s28_s20, 2  ;;  %p117_p1 = scmp.ne.s32.totalorder %s604_s14, %s600_s13 }
   0x7   : > { %p118_p2 = scmp.eq.s32.totalorder %s451_s18, 1  ;;  %p123_p3 = scmp.ne.s32.totalorder %s600_s13, %s596_s12 }
   0x8   : > { %s779_s20 = smov (%p30_p0, %s28_s20), 0  ;;  %p124_p5 = scmp.eq.s32.totalorder %s452_s19, 1 }
   0x9   : > { %p681_p4 = por %p118_p2, %p117_p1  ;;  %s102_s23 = ssub.s32 %s612_s16, %s779_s20 }
   0xa   : > { %p455_p6 = scmp.ge.s32.totalorder %s616_s17, 1  ;;  %p105_p7 = scmp.eq.s32.totalorder %s102_s23, 0 }
   0xb   : > { %p688_p8 = por %p124_p5, %p123_p3  ;;  %p158_p9 = scmp.lt.s32.totalorder %s616_s17, 3 }
   0xc   : > { %s694_s25 = scalar_select %p105_p7, %s604_s14, %s107_s21  }
   0xd   : > { %p159_p10 = pnand %p455_p6, %p158_p9 }
   0xe   : > { %p184_p11 = scmp.lt.s32.totalorder (!%p159_p10), %s608_s15, 1  ;;  %s181_s18 = sand.u32 (!%p159_p10), 1, %s600_s13  }
   0xf   : > { %162 = sbr.rel (%p159_p10) target bundleno = 434 (0x1b2), region = 32  ;;  %s456_s19 = sshll.u32 (!%p159_p10), %s181_s18, 3 }
  0x10   : > { %s462_s21 = sshll.u32 (!%p159_p10), %s608_s15, 7  ;;  %s183_s23 = scalar_lea.vmem (!%p159_p10), [#allocation2], %s456_s19 }
  0x11   : > { %s380_s26 = sshll.u32 (!%p159_p10), %s183_s23, 4  ;;  %s366_s30 = scalar_lea.sflag (!%p159_p10), [#allocation3], %s181_s18  ;;  %s722_s26 = int_to_ptr.vmem [resolvable:$true] %s380_s26 }
  0x12   : > { %s540_s4 = scalar_lea.vmem (!%p159_p10), %s722_s26, 128 }
  0x13   : > { %p541_p12 = scmp.ne.s32.totalorder (!%p159_p10), %s722_s26, %s540_s4 }
  0x14   : > { %v192_v0 = vld [vmem:[%s768_s1] sm:$0xff]  ;;  %vm194_vm0 = vcmask 64512   ;;  %s185_s28 = scalar_select %p184_p11, %s608_s15, 1  ;;  %v193_v2 = vld [vmem:[%s768_s1 + $0x8] sm:$0xff]  ;;  %v618_v3 = vmov 0.0   ;;  %vm619_vm1 = vmmov 0   ;;  %v279_v6 = vlaneseq }
  0x15   : > { %473 = vmatprep.mubr.msk.f32.mxu0 %vm194_vm0, %v192_v0  ;;  %476 = vmatprep.subr.mxu1 %v618_v3  ;;  %v289_v4 = vld [vmem:[%s769_s2 + $0x8] sm:$0xff]  ;;  %v288_v5 = vld [vmem:[%s769_s2] sm:$0xff]  ;;  %vm290_vm3 = vcmask 130048   ;;  %p542_p13 = pnand %p541_p12, %p681_p4  ;;  %s620_s15 = smov [#allocation2]  }
  0x16   : > { %s457_s29 = sshll.u32 %s185_s28, 3  ;;  %477 = vmatpush3.msra.mxu1 %v289_v4  ;;  %480 = vmatprep.mubr.msk.f32.mxu1 %vm619_vm1, %v618_v3  ;;  %v280_v8 = vand.u32 127, %v279_v6 }
  0x17   : > { %s190_s5 = scalar_lea.vmem %s767_s0, %s457_s29  ;;  %478 = vmatprep.subr.mxu1 %v618_v3  ;;  %s720_s29 = scalar_lea.hbm %s770_s3, %s462_s21 }
  0x18   : > { %v191_v1 = vld [vmem:[%s190_s5] sm:$0xff]  ;;  %479 = vmatpush3.msra.mxu1 %v288_v5  ;;  %vm284_vm2 = vcmp.lt.s32.totalorder %v280_v8, 16  ;;  %p543_p0 = pneg %p542_p13  ;;  %s544_s5 = sshll.u32 %s620_s15, 4  ;;  %s545_s5 = int_to_ptr.vmem [resolvable:$false] %s544_s5 }
  0x19   : > { %471 = vmatprep.subr.mxu0 %v191_v1  ;;  %s546_s6 = scalar_lea.vmem %s545_s5, 256  ;;  %p547_p1 = scmp.lt.s32.totalorder %s722_s26, %s545_s5 }
  0x1a   : > { %472 = vmatpush3.msra.mxu0 %v191_v1  ;;  %p548_p2 = scmp.lt.s32.totalorder %s546_s6, %s540_s4 }
  0x1b   : > { %474 = vmatmul.mubr.msk.f32.vlgmr.msra.gmra.mxu0 %vm194_vm0, %v193_v2 }
  0x1c   : > { %p549_p3 = por %p548_p2, %p547_p1 }
  0x1e   : > { %p550_p5 = pnand %p549_p3, %p543_p0 }
  0xdb   : > { %v475_v7 = vpop.f32.mrf.mxu0 }
  0xdc   : > { %v277_v10 = vmax.f32 %v475_v7, 0.0 }
  0xdd   : > { %v267_v9 = vpop.f32.mrf.mxu0 }
  0xde   : > { %v276_v11 = vmax.f32 %v267_v9, 0.0 }
  0xe0   : > { %v278_v12 = vadd.f32 %v277_v10, %v276_v11 }
  0xe2   : > { %v287_v13 = vsel %vm284_vm2, %v278_v12, 0.0 }
  0xe3   : > { %481 = vmatmul.mubr.msk.f32.vlgmr.msra.gmra.mxu1 %vm290_vm3, %v287_v13 }
 0x1a3   : > { %v360_v14 = vpop.f32.mrf.mxu1 }
 0x1a4   : > { %364 = vst.msk [vmem:[%s183_s23] sm:$0xff] %vm194_vm0, %v360_v14 }
 0x1a5   : > { %v482_v15 = vpop.f32.mrf.mxu1 }
 0x1a6   : > { %553 = shalt.err (!%p550_p5)
}
 0x1a7   : > { %s554_s7 = scalar_lea.hbm %s720_s29, 128  ;;  %s558_s10 = scalar_lea.hbm %s770_s3, 256 }
 0x1a8   : > { %p555_p6 = scmp.ne.s32.totalorder %s720_s29, %s554_s7  ;;  %p559_p10 = scmp.lt.s32.totalorder %s720_s29, %s770_s3 }
 0x1a9   : > { %p560_p11 = scmp.lt.s32.totalorder %s558_s10, %s554_s7 }
 0x1aa   : > { %p556_p7 = pnand %p555_p6, %p681_p4 }
 0x1ab   : > { %p561_p12 = por %p560_p11, %p559_p10 }
 0x1ac   : > { %p557_p9 = pneg %p556_p7 }
 0x1ae   : > { %p562_p13 = pnand %p561_p12, %p557_p9 }
 0x1b0   : > { %565 = shalt.err (!%p562_p13)
}
 0x1b1   : > { %483 = dma.vmem_to_hbm [thread:$0]  (%p681_p4), %s722_s26, 128, %s720_s29, %s366_s30  }
 0x1b2 PF: > { %p489_p0 = scmp.ge.s32.totalorder %s616_s17, 2  ;;  %s392_s19 = sand.u32 1, %s596_s12  }
 0x1b3   : > { %s393_s21 = scalar_lea.sflag [#allocation3], %s392_s19 }
 0x1b4   : > { %p486_p1 = pnand %p489_p0, %p688_p8 }
 0x1b6   : > { %p487_p2 = pneg %p486_p1 }
 0x1b8   : > { %591 = dma.done.wait (%p487_p2), %s393_s21, 128  }
 0x1b9   : > { %593 = vsyncadd (%p487_p2), %s393_s21, 4294967168  ;;  %s16_s17 = sadd.s32 1, %s616_s17   ;;  %s773_s12 = smov %s600_s13 }
 0x1ba   : > { %p13_p3 = scmp.ge.s32.totalorder %s16_s17, 4   ;;  %s774_s13 = smov %s604_s14 }
 0x1bb   : > { %s775_s14 = smov %s694_s25  ;;  %s776_s15 = smov %s612_s16 }
 0x1bc   : > { %s777_s16 = smov %s779_s20  ;;  %15 = sbr.rel (!%p13_p3) target bundleno = 4 (0x4), region = 67 }
 0x1c1   :  { %398 = vsyncpa [#allocation3], 1 }
 0x1c2   :  { %400 = vsyncpa [#allocation3 + $0x1], 1 }

</bundles_post_ra>
